<compile_context>
chip_gen: v5e
topology: v5e:2x2
jax: 0.10.0
libtpu: 0.0.40
codegen_flags: <defaults>
</compile_context>

<pallas_src>
import jax
import jax.numpy as jnp
import numpy as np
from jax import lax
from jax.experimental import pallas as pl
from jax.experimental.pallas import tpu as pltpu

INPUT_SIZE = 11
OUTPUT_SIZE = 11
HIDDEN = 64
NUM_HEADS = 4
HEAD_DIM = HIDDEN // NUM_HEADS
NUM_LAYERS = 2


def model_kernel(x_ref, fc1_wt_ref, fc1_b_ref,
                 wpack_ref, bpack_ref, opb_ref, headmask_ref,
                 fc2_wt_ref, fc2_b_ref, out_ref):
    x = x_ref[...]                                              # (B, 11) f32

    # fc1 + relu (kept f32: K=11, preserves raw-input precision; tiny dot)
    h = jnp.dot(x, fc1_wt_ref[...], preferred_element_type=jnp.float32) + fc1_b_ref[...]
    h = jnp.maximum(h, 0.0)                                     # (B, 64)

    for i in range(NUM_LAYERS):                                 # static unroll
        # one fused projection per layer: [Q | K | VO_h0 | VO_h1 | VO_h2 | VO_h3]
        # (q/k/v Linears + in_proj + 1/sqrt(d) scale + per-head out_proj fold
        #  are all precomputed on the host)
        proj = jnp.dot(h.astype(jnp.bfloat16), wpack_ref[i],
                       preferred_element_type=jnp.float32) + bpack_ref[i]   # (B, 384)
        q = proj[:, 0:HIDDEN]                                   # scale already folded in
        k = proj[:, HIDDEN:2 * HIDDEN]

        acc = jnp.zeros((x.shape[0], HIDDEN), jnp.float32)
        for hd in range(NUM_HEADS):
            # (q * m_h) @ k^T == q_h @ k_h^T : VPU mask instead of lane slices
            qm = q * headmask_ref[hd]                           # (B, 64)
            s = lax.dot_general(qm, k, (((1,), (1,)), ((), ())),
                                preferred_element_type=jnp.float32)         # (B, B)
            m = jnp.max(s, axis=-1, keepdims=True)
            e = jnp.exp(s - m)
            p = e * pl.reciprocal(jnp.sum(e, axis=-1, keepdims=True), approx=True)
            # head-h value already multiplied by its out_proj slice on the host
            vo = proj[:, (2 + hd) * HIDDEN:(3 + hd) * HIDDEN]   # (B, 64)
            acc = acc + jnp.dot(p, vo, preferred_element_type=jnp.float32)
        h = jnp.maximum(acc + opb_ref[i], 0.0)                  # (B, 64)

    # fc2 + relu + softmax over the feature axis (exact f32 divide -> rows sum to 1)
    y = jnp.dot(h.astype(jnp.bfloat16), fc2_wt_ref[...],
                preferred_element_type=jnp.float32) + fc2_b_ref[...]
    y = jnp.maximum(y, 0.0)
    m = jnp.max(y, axis=-1, keepdims=True)
    e = jnp.exp(y - m)
    out_ref[...] = e / jnp.sum(e, axis=-1, keepdims=True)


def prepare_kernel_params(p):
    """Host-side (pure NumPy) one-time weight rework:
       * fold q/k/v Linear + MHA in_proj + 1/sqrt(d) scale + per-head out_proj
         into one packed (HIDDEN, 6*HIDDEN) weight per layer,
       * pre-transpose everything so the kernel never transposes,
       * pre-cast MXU weights to bf16 (f32 biases, f32 accumulation in-kernel)."""
    g = lambda a: np.asarray(a, dtype=np.float32)
    scale = 1.0 / np.sqrt(HEAD_DIM)
    wpack, bpack, opb = [], [], []
    for i in range(NUM_LAYERS):
        ipw, ipb = g(p["ipw"][i]), g(p["ipb"][i])               # (192, 64), (1, 192)
        effs = []
        for j, (w, b) in enumerate(((p["qw"][i], p["qb"][i]),
                                    (p["kw"][i], p["kb"][i]),
                                    (p["vw"][i], p["vb"][i]))):
            w, b = g(w), g(b)
            ipw_j = ipw[j * HIDDEN:(j + 1) * HIDDEN]            # (64, 64)
            ipb_j = ipb[:, j * HIDDEN:(j + 1) * HIDDEN]         # (1, 64)
            # (h @ w.T + b) @ ipw_j.T + ipb_j == h @ (ipw_j @ w).T + (b @ ipw_j.T + ipb_j)
            effs.append(((ipw_j @ w).T, b @ ipw_j.T + ipb_j))   # input-major weight
        (wq, bq), (wk, bk), (wv, bv) = effs
        opwt = g(p["opw"][i]).T                                 # (64, 64) input-major

        ws = [wq * scale, wk]                                   # softmax scale into Q
        bs = [bq * scale, bk]
        for hd in range(NUM_HEADS):                             # fold V_h @ out_proj_h
            lo, hi = hd * HEAD_DIM, (hd + 1) * HEAD_DIM
            ws.append(wv[:, lo:hi] @ opwt[lo:hi, :])            # (64, 64)
            bs.append(bv[:, lo:hi] @ opwt[lo:hi, :])            # (1, 64)
        wpack.append(np.concatenate(ws, axis=1))                # (64, 384)
        bpack.append(np.concatenate(bs, axis=1))                # (1, 384)
        opb.append(g(p["opb"][i]))

    headmask = np.zeros((NUM_HEADS, 1, HIDDEN), np.float32)
    for hd in range(NUM_HEADS):
        headmask[hd, 0, hd * HEAD_DIM:(hd + 1) * HEAD_DIM] = 1.0

    return {
        "fc1_wt": jnp.asarray(g(p["fc1_w"]).T),                           # (11, 64) f32
        "fc1_b": jnp.asarray(g(p["fc1_b"])),                              # (1, 64)  f32
        "wpack": jnp.asarray(np.stack(wpack), dtype=jnp.bfloat16),        # (L, 64, 384) bf16
        "bpack": jnp.asarray(np.stack(bpack)),                            # (L, 1, 384)  f32
        "opb": jnp.asarray(np.stack(opb)),                                # (L, 1, 64)   f32
        "headmask": jnp.asarray(headmask),                                # (H, 1, 64)   f32
        "fc2_wt": jnp.asarray(g(p["fc2_w"]).T, dtype=jnp.bfloat16),       # (64, 11) bf16
        "fc2_b": jnp.asarray(g(p["fc2_b"])),                              # (1, 11)  f32
    }


def run_kernel(x, kp):
    B = x.shape[0]
    inputs = (x,
              kp["fc1_wt"], kp["fc1_b"],
              kp["wpack"], kp["bpack"], kp["opb"], kp["headmask"],
              kp["fc2_wt"], kp["fc2_b"])
    vmem = pl.BlockSpec(memory_space=pltpu.MemorySpace.VMEM)
    return pl.pallas_call(
        model_kernel,
        out_shape=jax.ShapeDtypeStruct((B, OUTPUT_SIZE), jnp.float32),
        in_specs=[vmem] * len(inputs),
        out_specs=vmem,
    )(*inputs)


def model_forward(x, params):
    kp = prepare_kernel_params(params)      # host-side NumPy weight fusion (one-time)
    return run_kernel(x, kp)


# ---------- pure-JAX f32 reference (faithful to the PyTorch module) ----------
def reference_forward(x, p):
    h = jnp.maximum(x @ p["fc1_w"].T + p["fc1_b"], 0.0)
    scale = 1.0 / np.sqrt(HEAD_DIM)
    for i in range(NUM_LAYERS):
        q_in = h @ p["qw"][i].T + p["qb"][i]
        k_in = h @ p["kw"][i].T + p["kb"][i]
        v_in = h @ p["vw"][i].T + p["vb"][i]
        ipw, ipb = p["ipw"][i], p["ipb"][i]
        q = q_in @ ipw[:HIDDEN].T + ipb[:, :HIDDEN]
        k = k_in @ ipw[HIDDEN:2 * HIDDEN].T + ipb[:, HIDDEN:2 * HIDDEN]
        v = v_in @ ipw[2 * HIDDEN:].T + ipb[:, 2 * HIDDEN:]
        outs = []
        for hd in range(NUM_HEADS):
            lo, hi = hd * HEAD_DIM, (hd + 1) * HEAD_DIM
            s = (q[:, lo:hi] * scale) @ k[:, lo:hi].T
            pbt = jax.nn.softmax(s, axis=-1)
            outs.append(pbt @ v[:, lo:hi])
        attn = jnp.concatenate(outs, axis=-1) @ p["opw"][i].T + p["opb"][i]
        h = jnp.maximum(attn, 0.0)
    y = jnp.maximum(h @ p["fc2_w"].T + p["fc2_b"], 0.0)
    return jax.nn.softmax(y, axis=1)


def init_params(key):
    keys = jax.random.split(key, 16)

    def uni(k, shape, fan_in):
        b = 1.0 / np.sqrt(fan_in)
        return jax.random.uniform(k, shape, jnp.float32, -b, b)

    return {
        "fc1_w": uni(keys[0], (HIDDEN, INPUT_SIZE), INPUT_SIZE),
        "fc1_b": uni(keys[1], (1, HIDDEN), INPUT_SIZE),
        "qw": uni(keys[2], (NUM_LAYERS, HIDDEN, HIDDEN), HIDDEN),
        "qb": uni(keys[3], (NUM_LAYERS, 1, HIDDEN), HIDDEN),
        "kw": uni(keys[4], (NUM_LAYERS, HIDDEN, HIDDEN), HIDDEN),
        "kb": uni(keys[5], (NUM_LAYERS, 1, HIDDEN), HIDDEN),
        "vw": uni(keys[6], (NUM_LAYERS, HIDDEN, HIDDEN), HIDDEN),
        "vb": uni(keys[7], (NUM_LAYERS, 1, HIDDEN), HIDDEN),
        "ipw": uni(keys[8], (NUM_LAYERS, 3 * HIDDEN, HIDDEN), HIDDEN),
        "ipb": jnp.zeros((NUM_LAYERS, 1, 3 * HIDDEN), jnp.float32),
        "opw": uni(keys[9], (NUM_LAYERS, HIDDEN, HIDDEN), HIDDEN),
        "opb": jnp.zeros((NUM_LAYERS, 1, HIDDEN), jnp.float32),
        "fc2_w": uni(keys[10], (OUTPUT_SIZE, HIDDEN), HIDDEN),
        "fc2_b": uni(keys[11], (1, OUTPUT_SIZE), HIDDEN),
    }


if __name__ == "__main__":
    key = jax.random.PRNGKey(0)
    pkey, xkey = jax.random.split(key)
    params = init_params(pkey)

    B = 8
    x = jax.random.normal(xkey, (B, INPUT_SIZE), jnp.float32)

    out = jax.block_until_ready(model_forward(x, params))
    ref = jax.block_until_ready(reference_forward(x, params))

    assert out.shape == (B, OUTPUT_SIZE)
    # bf16 MXU operands + approx reciprocal in attention softmax -> slightly
    # relaxed comparison against the f32 reference
    assert np.allclose(np.asarray(out), np.asarray(ref), atol=2e-2, rtol=2e-2)
    # final softmax uses exact f32 division -> rows are probability distributions
    assert np.allclose(np.asarray(out).sum(axis=1), 1.0, atol=1e-4)

    print("KERNEL_OK")
</pallas_src>

<mosaic_0001>
module attributes {stable_mosaic.version = 11 : i64} {
  func.func @model_kernel(%arg0: memref<8x11xf32, #tpu.memory_space<vmem>>, %arg1: memref<11x64xf32, #tpu.memory_space<vmem>>, %arg2: memref<1x64xf32, #tpu.memory_space<vmem>>, %arg3: memref<2x64x384xbf16, #tpu.memory_space<vmem>>, %arg4: memref<2x1x384xf32, #tpu.memory_space<vmem>>, %arg5: memref<2x1x64xf32, #tpu.memory_space<vmem>>, %arg6: memref<4x1x64xf32, #tpu.memory_space<vmem>>, %arg7: memref<64x11xbf16, #tpu.memory_space<vmem>>, %arg8: memref<1x11xf32, #tpu.memory_space<vmem>>, %arg9: memref<8x11xf32, #tpu.memory_space<vmem>>) attributes {dimension_semantics = [], scalar_prefetch = 0 : i64, scratch_operands = 0 : i64, tpu.core_type = #tpu.core_type<tc>} {
    %c0 = arith.constant 0 : index
    %c0_0 = arith.constant 0 : index
    %0 = vector.load %arg0[%c0, %c0_0] : memref<8x11xf32, #tpu.memory_space<vmem>>, vector<8x11xf32>
    %c0_1 = arith.constant 0 : index
    %c0_2 = arith.constant 0 : index
    %1 = vector.load %arg1[%c0_1, %c0_2] : memref<11x64xf32, #tpu.memory_space<vmem>>, vector<11x64xf32>
    %cst = arith.constant dense<0.000000e+00> : vector<8x64xf32>
    %2 = tpu.matmul %0, %1, %cst {dimension_numbers = #tpu.dot_dimension_numbers<[1], [0], [0], [1], [0, 0, 1, 1], [], []>} : vector<8x11xf32>, vector<11x64xf32>, vector<8x64xf32> -> vector<8x64xf32>
    %c0_3 = arith.constant 0 : index
    %c0_4 = arith.constant 0 : index
    %3 = vector.load %arg2[%c0_3, %c0_4] : memref<1x64xf32, #tpu.memory_space<vmem>>, vector<1x64xf32>
    %4 = vector.broadcast %3 : vector<1x64xf32> to vector<8x64xf32>
    %5 = arith.addf %2, %4 : vector<8x64xf32>
    %cst_5 = arith.constant 0.000000e+00 : f32
    %6 = vector.broadcast %cst_5 : f32 to vector<8x64xf32>
    %7 = arith.maximumf %5, %6 : vector<8x64xf32>
    %8 = arith.truncf %7 : vector<8x64xf32> to vector<8x64xbf16>
    %c0_6 = arith.constant 0 : index
    %c0_7 = arith.constant 0 : index
    %c0_8 = arith.constant 0 : index
    %9 = vector.load %arg3[%c0_6, %c0_7, %c0_8] : memref<2x64x384xbf16, #tpu.memory_space<vmem>>, vector<1x64x384xbf16>
    %10 = vector.shape_cast %9 : vector<1x64x384xbf16> to vector<64x384xbf16>
    %cst_9 = arith.constant dense<0.000000e+00> : vector<8x384xf32>
    %11 = tpu.matmul %8, %10, %cst_9 {dimension_numbers = #tpu.dot_dimension_numbers<[1], [0], [0], [1], [0, 0, 1, 1], [], []>} : vector<8x64xbf16>, vector<64x384xbf16>, vector<8x384xf32> -> vector<8x384xf32>
    %c0_10 = arith.constant 0 : index
    %c0_11 = arith.constant 0 : index
    %c0_12 = arith.constant 0 : index
    %12 = vector.load %arg4[%c0_10, %c0_11, %c0_12] : memref<2x1x384xf32, #tpu.memory_space<vmem>>, vector<1x1x384xf32>
    %13 = vector.shape_cast %12 : vector<1x1x384xf32> to vector<1x384xf32>
    %14 = vector.broadcast %13 : vector<1x384xf32> to vector<8x384xf32>
    %15 = arith.addf %11, %14 : vector<8x384xf32>
    %16 = vector.extract_strided_slice %15 {offsets = [0, 0], sizes = [8, 64], strides = [1, 1]} : vector<8x384xf32> to vector<8x64xf32>
    %17 = vector.extract_strided_slice %15 {offsets = [0, 64], sizes = [8, 64], strides = [1, 1]} : vector<8x384xf32> to vector<8x64xf32>
    %cst_13 = arith.constant 0.000000e+00 : f32
    %18 = vector.broadcast %cst_13 : f32 to vector<8x64xf32>
    %c0_14 = arith.constant 0 : index
    %c0_15 = arith.constant 0 : index
    %c0_16 = arith.constant 0 : index
    %19 = vector.load %arg6[%c0_14, %c0_15, %c0_16] : memref<4x1x64xf32, #tpu.memory_space<vmem>>, vector<1x1x64xf32>
    %20 = vector.shape_cast %19 : vector<1x1x64xf32> to vector<1x64xf32>
    %21 = vector.broadcast %20 : vector<1x64xf32> to vector<8x64xf32>
    %22 = arith.mulf %16, %21 : vector<8x64xf32>
    %cst_17 = arith.constant dense<0.000000e+00> : vector<8x8xf32>
    %23 = tpu.matmul %22, %17, %cst_17 {dimension_numbers = #tpu.dot_dimension_numbers<[1], [1], [0], [0], [0, 0, 1, 0], [], []>} : vector<8x64xf32>, vector<8x64xf32>, vector<8x8xf32> -> vector<8x8xf32>
    %cst_18 = arith.constant dense<0xFF800000> : vector<8xf32>
    %24 = vector.multi_reduction <maximumf>, %23, %cst_18 [1] : vector<8x8xf32> to vector<8xf32>
    %25 = vector.shape_cast %24 : vector<8xf32> to vector<8x1xf32>
    %26 = vector.broadcast %25 : vector<8x1xf32> to vector<8x8xf32>
    %27 = arith.subf %23, %26 : vector<8x8xf32>
    %28 = math.exp %27 : vector<8x8xf32>
    %cst_19 = arith.constant dense<0.000000e+00> : vector<8xf32>
    %29 = vector.multi_reduction <add>, %28, %cst_19 [1] : vector<8x8xf32> to vector<8xf32>
    %30 = vector.shape_cast %29 : vector<8xf32> to vector<8x1xf32>
    %31 = tpu.reciprocal %30 {approx = true} : vector<8x1xf32> -> vector<8x1xf32>
    %32 = vector.broadcast %31 : vector<8x1xf32> to vector<8x8xf32>
    %33 = arith.mulf %28, %32 : vector<8x8xf32>
    %34 = vector.extract_strided_slice %15 {offsets = [0, 128], sizes = [8, 64], strides = [1, 1]} : vector<8x384xf32> to vector<8x64xf32>
    %cst_20 = arith.constant dense<0.000000e+00> : vector<8x64xf32>
    %35 = tpu.matmul %33, %34, %cst_20 {dimension_numbers = #tpu.dot_dimension_numbers<[1], [0], [0], [1], [0, 0, 1, 1], [], []>} : vector<8x8xf32>, vector<8x64xf32>, vector<8x64xf32> -> vector<8x64xf32>
    %36 = arith.addf %18, %35 : vector<8x64xf32>
    %c1 = arith.constant 1 : index
    %c0_21 = arith.constant 0 : index
    %c0_22 = arith.constant 0 : index
    %37 = vector.load %arg6[%c1, %c0_21, %c0_22] : memref<4x1x64xf32, #tpu.memory_space<vmem>>, vector<1x1x64xf32>
    %38 = vector.shape_cast %37 : vector<1x1x64xf32> to vector<1x64xf32>
    %39 = vector.broadcast %38 : vector<1x64xf32> to vector<8x64xf32>
    %40 = arith.mulf %16, %39 : vector<8x64xf32>
    %cst_23 = arith.constant dense<0.000000e+00> : vector<8x8xf32>
    %41 = tpu.matmul %40, %17, %cst_23 {dimension_numbers = #tpu.dot_dimension_numbers<[1], [1], [0], [0], [0, 0, 1, 0], [], []>} : vector<8x64xf32>, vector<8x64xf32>, vector<8x8xf32> -> vector<8x8xf32>
    %cst_24 = arith.constant dense<0xFF800000> : vector<8xf32>
    %42 = vector.multi_reduction <maximumf>, %41, %cst_24 [1] : vector<8x8xf32> to vector<8xf32>
    %43 = vector.shape_cast %42 : vector<8xf32> to vector<8x1xf32>
    %44 = vector.broadcast %43 : vector<8x1xf32> to vector<8x8xf32>
    %45 = arith.subf %41, %44 : vector<8x8xf32>
    %46 = math.exp %45 : vector<8x8xf32>
    %cst_25 = arith.constant dense<0.000000e+00> : vector<8xf32>
    %47 = vector.multi_reduction <add>, %46, %cst_25 [1] : vector<8x8xf32> to vector<8xf32>
    %48 = vector.shape_cast %47 : vector<8xf32> to vector<8x1xf32>
    %49 = tpu.reciprocal %48 {approx = true} : vector<8x1xf32> -> vector<8x1xf32>
    %50 = vector.broadcast %49 : vector<8x1xf32> to vector<8x8xf32>
    %51 = arith.mulf %46, %50 : vector<8x8xf32>
    %52 = vector.extract_strided_slice %15 {offsets = [0, 192], sizes = [8, 64], strides = [1, 1]} : vector<8x384xf32> to vector<8x64xf32>
    %cst_26 = arith.constant dense<0.000000e+00> : vector<8x64xf32>
    %53 = tpu.matmul %51, %52, %cst_26 {dimension_numbers = #tpu.dot_dimension_numbers<[1], [0], [0], [1], [0, 0, 1, 1], [], []>} : vector<8x8xf32>, vector<8x64xf32>, vector<8x64xf32> -> vector<8x64xf32>
    %54 = arith.addf %36, %53 : vector<8x64xf32>
    %c2 = arith.constant 2 : index
    %c0_27 = arith.constant 0 : index
    %c0_28 = arith.constant 0 : index
    %55 = vector.load %arg6[%c2, %c0_27, %c0_28] : memref<4x1x64xf32, #tpu.memory_space<vmem>>, vector<1x1x64xf32>
    %56 = vector.shape_cast %55 : vector<1x1x64xf32> to vector<1x64xf32>
    %57 = vector.broadcast %56 : vector<1x64xf32> to vector<8x64xf32>
    %58 = arith.mulf %16, %57 : vector<8x64xf32>
    %cst_29 = arith.constant dense<0.000000e+00> : vector<8x8xf32>
    %59 = tpu.matmul %58, %17, %cst_29 {dimension_numbers = #tpu.dot_dimension_numbers<[1], [1], [0], [0], [0, 0, 1, 0], [], []>} : vector<8x64xf32>, vector<8x64xf32>, vector<8x8xf32> -> vector<8x8xf32>
    %cst_30 = arith.constant dense<0xFF800000> : vector<8xf32>
    %60 = vector.multi_reduction <maximumf>, %59, %cst_30 [1] : vector<8x8xf32> to vector<8xf32>
    %61 = vector.shape_cast %60 : vector<8xf32> to vector<8x1xf32>
    %62 = vector.broadcast %61 : vector<8x1xf32> to vector<8x8xf32>
    %63 = arith.subf %59, %62 : vector<8x8xf32>
    %64 = math.exp %63 : vector<8x8xf32>
    %cst_31 = arith.constant dense<0.000000e+00> : vector<8xf32>
    %65 = vector.multi_reduction <add>, %64, %cst_31 [1] : vector<8x8xf32> to vector<8xf32>
    %66 = vector.shape_cast %65 : vector<8xf32> to vector<8x1xf32>
    %67 = tpu.reciprocal %66 {approx = true} : vector<8x1xf32> -> vector<8x1xf32>
    %68 = vector.broadcast %67 : vector<8x1xf32> to vector<8x8xf32>
    %69 = arith.mulf %64, %68 : vector<8x8xf32>
    %70 = vector.extract_strided_slice %15 {offsets = [0, 256], sizes = [8, 64], strides = [1, 1]} : vector<8x384xf32> to vector<8x64xf32>
    %cst_32 = arith.constant dense<0.000000e+00> : vector<8x64xf32>
    %71 = tpu.matmul %69, %70, %cst_32 {dimension_numbers = #tpu.dot_dimension_numbers<[1], [0], [0], [1], [0, 0, 1, 1], [], []>} : vector<8x8xf32>, vector<8x64xf32>, vector<8x64xf32> -> vector<8x64xf32>
    %72 = arith.addf %54, %71 : vector<8x64xf32>
    %c3 = arith.constant 3 : index
    %c0_33 = arith.constant 0 : index
    %c0_34 = arith.constant 0 : index
    %73 = vector.load %arg6[%c3, %c0_33, %c0_34] : memref<4x1x64xf32, #tpu.memory_space<vmem>>, vector<1x1x64xf32>
    %74 = vector.shape_cast %73 : vector<1x1x64xf32> to vector<1x64xf32>
    %75 = vector.broadcast %74 : vector<1x64xf32> to vector<8x64xf32>
    %76 = arith.mulf %16, %75 : vector<8x64xf32>
    %cst_35 = arith.constant dense<0.000000e+00> : vector<8x8xf32>
    %77 = tpu.matmul %76, %17, %cst_35 {dimension_numbers = #tpu.dot_dimension_numbers<[1], [1], [0], [0], [0, 0, 1, 0], [], []>} : vector<8x64xf32>, vector<8x64xf32>, vector<8x8xf32> -> vector<8x8xf32>
    %cst_36 = arith.constant dense<0xFF800000> : vector<8xf32>
    %78 = vector.multi_reduction <maximumf>, %77, %cst_36 [1] : vector<8x8xf32> to vector<8xf32>
    %79 = vector.shape_cast %78 : vector<8xf32> to vector<8x1xf32>
    %80 = vector.broadcast %79 : vector<8x1xf32> to vector<8x8xf32>
    %81 = arith.subf %77, %80 : vector<8x8xf32>
    %82 = math.exp %81 : vector<8x8xf32>
    %cst_37 = arith.constant dense<0.000000e+00> : vector<8xf32>
    %83 = vector.multi_reduction <add>, %82, %cst_37 [1] : vector<8x8xf32> to vector<8xf32>
    %84 = vector.shape_cast %83 : vector<8xf32> to vector<8x1xf32>
    %85 = tpu.reciprocal %84 {approx = true} : vector<8x1xf32> -> vector<8x1xf32>
    %86 = vector.broadcast %85 : vector<8x1xf32> to vector<8x8xf32>
    %87 = arith.mulf %82, %86 : vector<8x8xf32>
    %88 = vector.extract_strided_slice %15 {offsets = [0, 320], sizes = [8, 64], strides = [1, 1]} : vector<8x384xf32> to vector<8x64xf32>
    %cst_38 = arith.constant dense<0.000000e+00> : vector<8x64xf32>
    %89 = tpu.matmul %87, %88, %cst_38 {dimension_numbers = #tpu.dot_dimension_numbers<[1], [0], [0], [1], [0, 0, 1, 1], [], []>} : vector<8x8xf32>, vector<8x64xf32>, vector<8x64xf32> -> vector<8x64xf32>
    %90 = arith.addf %72, %89 : vector<8x64xf32>
    %c0_39 = arith.constant 0 : index
    %c0_40 = arith.constant 0 : index
    %c0_41 = arith.constant 0 : index
    %91 = vector.load %arg5[%c0_39, %c0_40, %c0_41] : memref<2x1x64xf32, #tpu.memory_space<vmem>>, vector<1x1x64xf32>
    %92 = vector.shape_cast %91 : vector<1x1x64xf32> to vector<1x64xf32>
    %93 = vector.broadcast %92 : vector<1x64xf32> to vector<8x64xf32>
    %94 = arith.addf %90, %93 : vector<8x64xf32>
    %cst_42 = arith.constant 0.000000e+00 : f32
    %95 = vector.broadcast %cst_42 : f32 to vector<8x64xf32>
    %96 = arith.maximumf %94, %95 : vector<8x64xf32>
    %97 = arith.truncf %96 : vector<8x64xf32> to vector<8x64xbf16>
    %c1_43 = arith.constant 1 : index
    %c0_44 = arith.constant 0 : index
    %c0_45 = arith.constant 0 : index
    %98 = vector.load %arg3[%c1_43, %c0_44, %c0_45] : memref<2x64x384xbf16, #tpu.memory_space<vmem>>, vector<1x64x384xbf16>
    %99 = vector.shape_cast %98 : vector<1x64x384xbf16> to vector<64x384xbf16>
    %cst_46 = arith.constant dense<0.000000e+00> : vector<8x384xf32>
    %100 = tpu.matmul %97, %99, %cst_46 {dimension_numbers = #tpu.dot_dimension_numbers<[1], [0], [0], [1], [0, 0, 1, 1], [], []>} : vector<8x64xbf16>, vector<64x384xbf16>, vector<8x384xf32> -> vector<8x384xf32>
    %c1_47 = arith.constant 1 : index
    %c0_48 = arith.constant 0 : index
    %c0_49 = arith.constant 0 : index
    %101 = vector.load %arg4[%c1_47, %c0_48, %c0_49] : memref<2x1x384xf32, #tpu.memory_space<vmem>>, vector<1x1x384xf32>
    %102 = vector.shape_cast %101 : vector<1x1x384xf32> to vector<1x384xf32>
    %103 = vector.broadcast %102 : vector<1x384xf32> to vector<8x384xf32>
    %104 = arith.addf %100, %103 : vector<8x384xf32>
    %105 = vector.extract_strided_slice %104 {offsets = [0, 0], sizes = [8, 64], strides = [1, 1]} : vector<8x384xf32> to vector<8x64xf32>
    %106 = vector.extract_strided_slice %104 {offsets = [0, 64], sizes = [8, 64], strides = [1, 1]} : vector<8x384xf32> to vector<8x64xf32>
    %cst_50 = arith.constant 0.000000e+00 : f32
    %107 = vector.broadcast %cst_50 : f32 to vector<8x64xf32>
    %c0_51 = arith.constant 0 : index
    %c0_52 = arith.constant 0 : index
    %c0_53 = arith.constant 0 : index
    %108 = vector.load %arg6[%c0_51, %c0_52, %c0_53] : memref<4x1x64xf32, #tpu.memory_space<vmem>>, vector<1x1x64xf32>
    %109 = vector.shape_cast %108 : vector<1x1x64xf32> to vector<1x64xf32>
    %110 = vector.broadcast %109 : vector<1x64xf32> to vector<8x64xf32>
    %111 = arith.mulf %105, %110 : vector<8x64xf32>
    %cst_54 = arith.constant dense<0.000000e+00> : vector<8x8xf32>
    %112 = tpu.matmul %111, %106, %cst_54 {dimension_numbers = #tpu.dot_dimension_numbers<[1], [1], [0], [0], [0, 0, 1, 0], [], []>} : vector<8x64xf32>, vector<8x64xf32>, vector<8x8xf32> -> vector<8x8xf32>
    %cst_55 = arith.constant dense<0xFF800000> : vector<8xf32>
    %113 = vector.multi_reduction <maximumf>, %112, %cst_55 [1] : vector<8x8xf32> to vector<8xf32>
    %114 = vector.shape_cast %113 : vector<8xf32> to vector<8x1xf32>
    %115 = vector.broadcast %114 : vector<8x1xf32> to vector<8x8xf32>
    %116 = arith.subf %112, %115 : vector<8x8xf32>
    %117 = math.exp %116 : vector<8x8xf32>
    %cst_56 = arith.constant dense<0.000000e+00> : vector<8xf32>
    %118 = vector.multi_reduction <add>, %117, %cst_56 [1] : vector<8x8xf32> to vector<8xf32>
    %119 = vector.shape_cast %118 : vector<8xf32> to vector<8x1xf32>
    %120 = tpu.reciprocal %119 {approx = true} : vector<8x1xf32> -> vector<8x1xf32>
    %121 = vector.broadcast %120 : vector<8x1xf32> to vector<8x8xf32>
    %122 = arith.mulf %117, %121 : vector<8x8xf32>
    %123 = vector.extract_strided_slice %104 {offsets = [0, 128], sizes = [8, 64], strides = [1, 1]} : vector<8x384xf32> to vector<8x64xf32>
    %cst_57 = arith.constant dense<0.000000e+00> : vector<8x64xf32>
    %124 = tpu.matmul %122, %123, %cst_57 {dimension_numbers = #tpu.dot_dimension_numbers<[1], [0], [0], [1], [0, 0, 1, 1], [], []>} : vector<8x8xf32>, vector<8x64xf32>, vector<8x64xf32> -> vector<8x64xf32>
    %125 = arith.addf %107, %124 : vector<8x64xf32>
    %c1_58 = arith.constant 1 : index
    %c0_59 = arith.constant 0 : index
    %c0_60 = arith.constant 0 : index
    %126 = vector.load %arg6[%c1_58, %c0_59, %c0_60] : memref<4x1x64xf32, #tpu.memory_space<vmem>>, vector<1x1x64xf32>
    %127 = vector.shape_cast %126 : vector<1x1x64xf32> to vector<1x64xf32>
    %128 = vector.broadcast %127 : vector<1x64xf32> to vector<8x64xf32>
    %129 = arith.mulf %105, %128 : vector<8x64xf32>
    %cst_61 = arith.constant dense<0.000000e+00> : vector<8x8xf32>
    %130 = tpu.matmul %129, %106, %cst_61 {dimension_numbers = #tpu.dot_dimension_numbers<[1], [1], [0], [0], [0, 0, 1, 0], [], []>} : vector<8x64xf32>, vector<8x64xf32>, vector<8x8xf32> -> vector<8x8xf32>
    %cst_62 = arith.constant dense<0xFF800000> : vector<8xf32>
    %131 = vector.multi_reduction <maximumf>, %130, %cst_62 [1] : vector<8x8xf32> to vector<8xf32>
    %132 = vector.shape_cast %131 : vector<8xf32> to vector<8x1xf32>
    %133 = vector.broadcast %132 : vector<8x1xf32> to vector<8x8xf32>
    %134 = arith.subf %130, %133 : vector<8x8xf32>
    %135 = math.exp %134 : vector<8x8xf32>
    %cst_63 = arith.constant dense<0.000000e+00> : vector<8xf32>
    %136 = vector.multi_reduction <add>, %135, %cst_63 [1] : vector<8x8xf32> to vector<8xf32>
    %137 = vector.shape_cast %136 : vector<8xf32> to vector<8x1xf32>
    %138 = tpu.reciprocal %137 {approx = true} : vector<8x1xf32> -> vector<8x1xf32>
    %139 = vector.broadcast %138 : vector<8x1xf32> to vector<8x8xf32>
    %140 = arith.mulf %135, %139 : vector<8x8xf32>
    %141 = vector.extract_strided_slice %104 {offsets = [0, 192], sizes = [8, 64], strides = [1, 1]} : vector<8x384xf32> to vector<8x64xf32>
    %cst_64 = arith.constant dense<0.000000e+00> : vector<8x64xf32>
    %142 = tpu.matmul %140, %141, %cst_64 {dimension_numbers = #tpu.dot_dimension_numbers<[1], [0], [0], [1], [0, 0, 1, 1], [], []>} : vector<8x8xf32>, vector<8x64xf32>, vector<8x64xf32> -> vector<8x64xf32>
    %143 = arith.addf %125, %142 : vector<8x64xf32>
    %c2_65 = arith.constant 2 : index
    %c0_66 = arith.constant 0 : index
    %c0_67 = arith.constant 0 : index
    %144 = vector.load %arg6[%c2_65, %c0_66, %c0_67] : memref<4x1x64xf32, #tpu.memory_space<vmem>>, vector<1x1x64xf32>
    %145 = vector.shape_cast %144 : vector<1x1x64xf32> to vector<1x64xf32>
    %146 = vector.broadcast %145 : vector<1x64xf32> to vector<8x64xf32>
    %147 = arith.mulf %105, %146 : vector<8x64xf32>
    %cst_68 = arith.constant dense<0.000000e+00> : vector<8x8xf32>
    %148 = tpu.matmul %147, %106, %cst_68 {dimension_numbers = #tpu.dot_dimension_numbers<[1], [1], [0], [0], [0, 0, 1, 0], [], []>} : vector<8x64xf32>, vector<8x64xf32>, vector<8x8xf32> -> vector<8x8xf32>
    %cst_69 = arith.constant dense<0xFF800000> : vector<8xf32>
    %149 = vector.multi_reduction <maximumf>, %148, %cst_69 [1] : vector<8x8xf32> to vector<8xf32>
    %150 = vector.shape_cast %149 : vector<8xf32> to vector<8x1xf32>
    %151 = vector.broadcast %150 : vector<8x1xf32> to vector<8x8xf32>
    %152 = arith.subf %148, %151 : vector<8x8xf32>
    %153 = math.exp %152 : vector<8x8xf32>
    %cst_70 = arith.constant dense<0.000000e+00> : vector<8xf32>
    %154 = vector.multi_reduction <add>, %153, %cst_70 [1] : vector<8x8xf32> to vector<8xf32>
    %155 = vector.shape_cast %154 : vector<8xf32> to vector<8x1xf32>
    %156 = tpu.reciprocal %155 {approx = true} : vector<8x1xf32> -> vector<8x1xf32>
    %157 = vector.broadcast %156 : vector<8x1xf32> to vector<8x8xf32>
    %158 = arith.mulf %153, %157 : vector<8x8xf32>
    %159 = vector.extract_strided_slice %104 {offsets = [0, 256], sizes = [8, 64], strides = [1, 1]} : vector<8x384xf32> to vector<8x64xf32>
    %cst_71 = arith.constant dense<0.000000e+00> : vector<8x64xf32>
    %160 = tpu.matmul %158, %159, %cst_71 {dimension_numbers = #tpu.dot_dimension_numbers<[1], [0], [0], [1], [0, 0, 1, 1], [], []>} : vector<8x8xf32>, vector<8x64xf32>, vector<8x64xf32> -> vector<8x64xf32>
    %161 = arith.addf %143, %160 : vector<8x64xf32>
    %c3_72 = arith.constant 3 : index
    %c0_73 = arith.constant 0 : index
    %c0_74 = arith.constant 0 : index
    %162 = vector.load %arg6[%c3_72, %c0_73, %c0_74] : memref<4x1x64xf32, #tpu.memory_space<vmem>>, vector<1x1x64xf32>
    %163 = vector.shape_cast %162 : vector<1x1x64xf32> to vector<1x64xf32>
    %164 = vector.broadcast %163 : vector<1x64xf32> to vector<8x64xf32>
    %165 = arith.mulf %105, %164 : vector<8x64xf32>
    %cst_75 = arith.constant dense<0.000000e+00> : vector<8x8xf32>
    %166 = tpu.matmul %165, %106, %cst_75 {dimension_numbers = #tpu.dot_dimension_numbers<[1], [1], [0], [0], [0, 0, 1, 0], [], []>} : vector<8x64xf32>, vector<8x64xf32>, vector<8x8xf32> -> vector<8x8xf32>
    %cst_76 = arith.constant dense<0xFF800000> : vector<8xf32>
    %167 = vector.multi_reduction <maximumf>, %166, %cst_76 [1] : vector<8x8xf32> to vector<8xf32>
    %168 = vector.shape_cast %167 : vector<8xf32> to vector<8x1xf32>
    %169 = vector.broadcast %168 : vector<8x1xf32> to vector<8x8xf32>
    %170 = arith.subf %166, %169 : vector<8x8xf32>
    %171 = math.exp %170 : vector<8x8xf32>
    %cst_77 = arith.constant dense<0.000000e+00> : vector<8xf32>
    %172 = vector.multi_reduction <add>, %171, %cst_77 [1] : vector<8x8xf32> to vector<8xf32>
    %173 = vector.shape_cast %172 : vector<8xf32> to vector<8x1xf32>
    %174 = tpu.reciprocal %173 {approx = true} : vector<8x1xf32> -> vector<8x1xf32>
    %175 = vector.broadcast %174 : vector<8x1xf32> to vector<8x8xf32>
    %176 = arith.mulf %171, %175 : vector<8x8xf32>
    %177 = vector.extract_strided_slice %104 {offsets = [0, 320], sizes = [8, 64], strides = [1, 1]} : vector<8x384xf32> to vector<8x64xf32>
    %cst_78 = arith.constant dense<0.000000e+00> : vector<8x64xf32>
    %178 = tpu.matmul %176, %177, %cst_78 {dimension_numbers = #tpu.dot_dimension_numbers<[1], [0], [0], [1], [0, 0, 1, 1], [], []>} : vector<8x8xf32>, vector<8x64xf32>, vector<8x64xf32> -> vector<8x64xf32>
    %179 = arith.addf %161, %178 : vector<8x64xf32>
    %c1_79 = arith.constant 1 : index
    %c0_80 = arith.constant 0 : index
    %c0_81 = arith.constant 0 : index
    %180 = vector.load %arg5[%c1_79, %c0_80, %c0_81] : memref<2x1x64xf32, #tpu.memory_space<vmem>>, vector<1x1x64xf32>
    %181 = vector.shape_cast %180 : vector<1x1x64xf32> to vector<1x64xf32>
    %182 = vector.broadcast %181 : vector<1x64xf32> to vector<8x64xf32>
    %183 = arith.addf %179, %182 : vector<8x64xf32>
    %cst_82 = arith.constant 0.000000e+00 : f32
    %184 = vector.broadcast %cst_82 : f32 to vector<8x64xf32>
    %185 = arith.maximumf %183, %184 : vector<8x64xf32>
    %186 = arith.truncf %185 : vector<8x64xf32> to vector<8x64xbf16>
    %c0_83 = arith.constant 0 : index
    %c0_84 = arith.constant 0 : index
    %187 = vector.load %arg7[%c0_83, %c0_84] : memref<64x11xbf16, #tpu.memory_space<vmem>>, vector<64x11xbf16>
    %cst_85 = arith.constant dense<0.000000e+00> : vector<8x11xf32>
    %188 = tpu.matmul %186, %187, %cst_85 {dimension_numbers = #tpu.dot_dimension_numbers<[1], [0], [0], [1], [0, 0, 1, 1], [], []>} : vector<8x64xbf16>, vector<64x11xbf16>, vector<8x11xf32> -> vector<8x11xf32>
    %c0_86 = arith.constant 0 : index
    %c0_87 = arith.constant 0 : index
    %189 = vector.load %arg8[%c0_86, %c0_87] : memref<1x11xf32, #tpu.memory_space<vmem>>, vector<1x11xf32>
    %190 = vector.broadcast %189 : vector<1x11xf32> to vector<8x11xf32>
    %191 = arith.addf %188, %190 : vector<8x11xf32>
    %cst_88 = arith.constant 0.000000e+00 : f32
    %192 = vector.broadcast %cst_88 : f32 to vector<8x11xf32>
    %193 = arith.maximumf %191, %192 : vector<8x11xf32>
    %cst_89 = arith.constant dense<0xFF800000> : vector<8xf32>
    %194 = vector.multi_reduction <maximumf>, %193, %cst_89 [1] : vector<8x11xf32> to vector<8xf32>
    %195 = vector.shape_cast %194 : vector<8xf32> to vector<8x1xf32>
    %196 = vector.broadcast %195 : vector<8x1xf32> to vector<8x11xf32>
    %197 = arith.subf %193, %196 : vector<8x11xf32>
    %198 = math.exp %197 : vector<8x11xf32>
    %cst_90 = arith.constant dense<0.000000e+00> : vector<8xf32>
    %199 = vector.multi_reduction <add>, %198, %cst_90 [1] : vector<8x11xf32> to vector<8xf32>
    %200 = vector.shape_cast %199 : vector<8xf32> to vector<8x1xf32>
    %201 = vector.broadcast %200 : vector<8x1xf32> to vector<8x11xf32>
    %202 = arith.divf %198, %201 : vector<8x11xf32>
    %c0_91 = arith.constant 0 : index
    %c0_92 = arith.constant 0 : index
    %203 = vector.load %arg9[%c0_91, %c0_92] : memref<8x11xf32, #tpu.memory_space<vmem>>, vector<8x11xf32>
    tpu.vector_store %arg9[%c0_91, %c0_92], %202 {strides = array<i32>} : memref<8x11xf32, #tpu.memory_space<vmem>>, vector<8x11xf32>,
    return
  }
}

</mosaic_0001>

<bundles_post_ra>
// kernel: tpu_custom_call.1
= control target key start
LH: loop header
LB: loop body
LE: loop exit
PB: predicated region body
PF: predicated region fallthrough
CT: control target
= control target key end

     0   :  { %14 = vsyncpa [#allocation3], 0  ;;  %s1455_s0 = inlined_call_operand.vmem [shape: f32[8,11], index: 0, kind: input, shape index: {}]   ;;  %s1456_s1 = inlined_call_operand.vmem [shape: f32[11,64], index: 1, kind: input, shape index: {}]   ;;  %s1457_s2 = inlined_call_operand.vmem [shape: f32[1,64], index: 2, kind: input, shape index: {}]   ;;  %s1458_s3 = inlined_call_operand.hbm [shape: bf16[2,64,384], index: 3, kind: input, shape index: {}]   ;;  %s1459_s4 = inlined_call_operand.vmem [shape: f32[2,1,384], index: 4, kind: input, shape index: {}]   ;;  %s1460_s5 = inlined_call_operand.vmem [shape: f32[2,1,64], index: 5, kind: input, shape index: {}]   ;;  %s1461_s6 = inlined_call_operand.vmem [shape: f32[4,1,64], index: 6, kind: input, shape index: {}]   ;;  %s1462_s7 = inlined_call_operand.vmem [shape: bf16[64,11], index: 7, kind: input, shape index: {}]   ;;  %s1463_s8 = inlined_call_operand.vmem [shape: f32[1,11], index: 8, kind: input, shape index: {}]   ;;  %s1464_s9 = inlined_call_operand.hbm [shape: f32[8,11], index: 9, kind: output, shape index: {}]  }
   0x1   :  { %15 = vsyncpa [#allocation4], 0  ;;  %s26_s11 = sshll.u32 %s1458_s3, 4  ;;  %s1253_s12 = smov [#allocation2]   ;;  %s27_s11 = int_to_ptr.hbm [resolvable:$true] %s26_s11 }
   0x2   :  { %s28_s13 = sshll.u32 %s1253_s12, 4  ;;  %s1254_s14 = smov 192   ;;  %s29_s13 = int_to_ptr.vmem [resolvable:$true] %s28_s13 }
   0x3   :  { %s1255_s15 = smov 12  }
   0x4   :  { %34 = dma.hbm_to_vmem [thread:$0]  %s27_s11, 3072, %s29_s13, [#allocation3], %s1254_s14, %s1254_s14, %s1255_s15  }
   0x5   :  { %1249 = dma.done.wait [#allocation3], 3072  }
   0x6   :  { %1250 = vsyncadd [#allocation3], 4294964224  ;;  %vm61_vm0 = vcmask 1042432   ;;  %v52_v0 = vld [vmem:[%s1456_s1 + $0x8] sm:$0x7]  ;;  %v51_v1 = vld [vmem:[%s1456_s1] sm:$0xff] }
   0x7   :  { %v50_v2 = vld [vmem:[%s1455_s0] sm:$0xff]  ;;  %vm57_vm1 = vcmask 89088   ;;  %974 = vmatpush.msk.msra.mxu0 %vm61_vm0, %v52_v0  ;;  %v1014_v3 = vld [vmem:[#allocation2 + $0x48] sm:$0xf]  ;;  %v1134_v4 = vld [vmem:[#allocation2 + $0x50] sm:$0xf0] }
   0x8   :  { %v1133_v5 = vld [vmem:[#allocation2 + $0x4c] sm:$0xf]  ;;  %v1015_v6 = vor.u32 %v1134_v4, %v1014_v3  ;;  %v1016_v7 = vld [vmem:[#allocation2 + $0x54] sm:$0xf0]  ;;  %v1022_v8 = vld [vmem:[#allocation2 + $0x50] sm:$0xf] }
   0x9   :  { %v1135_v9 = vld [vmem:[#allocation2 + $0x58] sm:$0xf0]  ;;  %80 = vmatpush.msra.mxu0 %v51_v1  ;;  %v1019_v10 = vor.u32 %v1133_v5, %v1016_v7  ;;  %v1002_v12 = vld [vmem:[#allocation2 + $0x30] sm:$0xf]  ;;  %v1130_v14 = vld [vmem:[#allocation2 + $0x34] sm:$0xf] }
   0xa   :  { %v1023_v11 = vor.u32 %v1135_v9, %v1022_v8  ;;  %v1131_v13 = vld [vmem:[#allocation2 + $0x38] sm:$0xf0]  ;;  %975 = vmatmul.msk.f32.vlgmr.msra.gmra.mxu0 %vm57_vm1, %v50_v2  ;;  %183 = vmatpush.bf16.msra.mxu1 %v1015_v6  ;;  %v1004_v16 = vld [vmem:[#allocation2 + $0x3c] sm:$0xf0]  ;;  %v1010_v17 = vld [vmem:[#allocation2 + $0x38] sm:$0xf] }
   0xb   :  { %v1003_v15 = vor.u32 %v1131_v13, %v1002_v12  ;;  %v1132_v18 = vld [vmem:[#allocation2 + $0x40] sm:$0xf0]  ;;  %196 = vmatpush.bf16.msra.mxu2 %v1019_v10  ;;  %v1007_v19 = vor.u32 %v1130_v14, %v1004_v16  ;;  %v990_v21 = vld [vmem:[#allocation2 + $0x18] sm:$0xf]  ;;  %v1127_v23 = vld [vmem:[#allocation2 + $0x1c] sm:$0xf] }
   0xc   :  { %209 = vmatpush.bf16.msra.mxu3 %v1023_v11  ;;  %v1011_v20 = vor.u32 %v1132_v18, %v1010_v17  ;;  %v1128_v22 = vld [vmem:[#allocation2 + $0x20] sm:$0xf0]  ;;  %v992_v25 = vld [vmem:[#allocation2 + $0x24] sm:$0xf0]  ;;  %v998_v26 = vld [vmem:[#allocation2 + $0x20] sm:$0xf] }
   0xd   :  { %v991_v24 = vor.u32 %v1128_v22, %v990_v21  ;;  %v1129_v27 = vld [vmem:[#allocation2 + $0x28] sm:$0xf0]  ;;  %v995_v28 = vor.u32 %v1127_v23, %v992_v25  ;;  %v978_v30 = vld [vmem:[#allocation2] sm:$0xf]  ;;  %v1124_v32 = vld [vmem:[#allocation2 + $0x4] sm:$0xf] }
   0xe   :  { %184 = vmatpush.bf16.msra.mxu1 %v1003_v15  ;;  %v999_v29 = vor.u32 %v1129_v27, %v998_v26  ;;  %v1125_v31 = vld [vmem:[#allocation2 + $0x8] sm:$0xf0]  ;;  %v980_v34 = vld [vmem:[#allocation2 + $0xc] sm:$0xf0]  ;;  %v986_v35 = vld [vmem:[#allocation2 + $0x8] sm:$0xf] }
   0xf   :  { %197 = vmatpush.bf16.msra.mxu2 %v1007_v19  ;;  %v979_v33 = vor.u32 %v1125_v31, %v978_v30  ;;  %v1126_v36 = vld [vmem:[#allocation2 + $0x10] sm:$0xf0]  ;;  %v983_v37 = vor.u32 %v1124_v32, %v980_v34  ;;  %v1157_v39 = vld [vmem:[%s1457_s2] ss:$0 sm:$0xff]  ;;  %vm175_vm2 = vcmask 523264   ;;  %s1256_s2 = smov 64  }
  0x10   :  { %210 = vmatpush.bf16.msra.mxu3 %v1011_v20  ;;  %v987_v38 = vor.u32 %v1126_v36, %v986_v35  ;;  %v103_v44 = vld [vmem:[%s1459_s4] sm:$0x7]  ;;  %vm251_vm3 = vcmask 64512   ;;  %v1373_v23 = vld [vmem:[%s1461_s6 + $0x3] ss:$0 sm:$0xff]  ;;  %s964_s22 = sshll.u32 %s1464_s9, 4  ;;  %s965_s22 = int_to_ptr.hbm [resolvable:$true] %s964_s22 }
  0x11   :  { %v105_v45 = vperm.slane %v103_v44, 0  ;;  %v106_v48 = vperm.slane %v103_v44, 1  ;;  %v1337_v55 = vld [vmem:[%s1461_s6] ss:$0 sm:$0xff]  ;;  %v1342_v56 = vld [vmem:[%s1461_s6 + $0x2] ss:$0 sm:$0xff] }
  0x12   :  { %185 = vmatpush.bf16.msra.mxu1 %v991_v24  ;;  %v1356_v60 = vld [vmem:[%s1461_s6 + $0x1] ss:$0 sm:$0xff]  ;;  %v107_v16 = vperm.slane %v103_v44, 2  ;;  %v1146_v44 = vld [vmem:[#allocation2 + $0xb0] sm:$0xf0] }
  0x13   :  { %198 = vmatpush.bf16.msra.mxu2 %v995_v28 }
  0x14   :  { %211 = vmatpush.bf16.msra.mxu3 %v999_v29 }
  0x16   :  { %186 = vmatpush.bf16.msra.mxu1 %v979_v33 }
  0x17   :  { %199 = vmatpush.bf16.msra.mxu2 %v983_v37 }
  0x18   :  { %212 = vmatpush.bf16.msra.mxu3 %v987_v38 }
  0x87   :  { %v82_v40 = vpop.f32.mrf.mxu0 }
  0x88   :  { %v83_v41 = vadd.f32 %v1157_v39, %v82_v40 }
  0x8a   :  { %v85_v42 = vmax.f32 %v83_v41, 0.0 }
  0x8c   :  { %v86_v43 = vpack.c.bf16 %v85_v42, %v85_v42 }
  0x8e   :  { %1024 = vmatmul.msk.bf16.vlgmr.msra.gmra.mxu1 %vm175_vm2, %v86_v43  ;;  %1025 = vmatmul.msk.bf16.vlgmr.msra.gmra.mxu2 %vm175_vm2, %v86_v43 }
  0x8f   :  { %1026 = vmatmul.msk.bf16.vlgmr.msra.gmra.mxu3 %vm175_vm2, %v86_v43  ;;  %v1081_v43 = vld [vmem:[#allocation2 + $0xa8] sm:$0xf] }
 0x10b   :  { %v188_v46 = vpop.f32.mrf.mxu1 }
 0x10c   :  { %v1330_v47 = vadd.f32 %v188_v46, %v105_v45  ;;  %v1145_v45 = vld [vmem:[#allocation2 + $0xac] sm:$0xf]  ;;  %v1082_v46 = vor.u32 %v1146_v44, %v1081_v43 }
 0x10e   :  { %224 = vrot.lane.b32.xlu0 %v1330_v47, %s1256_s2  ;;  %v222_v58 = vmul.f32 %v1337_v55, %v1330_v47  ;;  %v358_v59 = vmul.f32 %v1342_v56, %v1330_v47  ;;  %v268_v61 = vmul.f32 %v1356_v60, %v1330_v47  ;;  %v422_v24 = vmul.f32 %v1373_v23, %v1330_v47  ;;  %v1083_v47 = vld [vmem:[#allocation2 + $0xb4] sm:$0xf0] }
 0x111   :  { %v201_v49 = vpop.f32.mrf.mxu2 }
 0x112   :  { %v202_v50 = vadd.f32 %v201_v49, %v106_v48  ;;  %v214_v51 = vpop.f32.mrf.mxu3  ;;  %v1089_v48 = vld [vmem:[#allocation2 + $0xb0] sm:$0xf]  ;;  %v1147_v49 = vld [vmem:[#allocation2 + $0xb8] sm:$0xf0] }
 0x113   :  { %v190_v52 = vpop.f32.mrf.mxu1  ;;  %v215_v17 = vadd.f32 %v214_v51, %v107_v16  ;;  %v1090_v51 = vor.u32 %v1147_v49, %v1089_v48  ;;  %v1047_v16 = vld [vmem:[#allocation2 + $0x6c] sm:$0xf0] }
 0x114   :  { %348 = vmatpush.msrb.mxu1 %v202_v50  ;;  %v1069_v52 = vld [vmem:[#allocation2 + $0x90] sm:$0xf] }
 0x119   :  { %v203_v53 = vpop.f32.mrf.mxu2 }
 0x11a   :  { %v216_v54 = vpop.f32.mrf.mxu3  ;;  %v1143_v53 = vld [vmem:[#allocation2 + $0x98] sm:$0xf0] }
 0x11b   :  { %v1142_v54 = vld [vmem:[#allocation2 + $0x94] sm:$0xf] }
 0x180   :  { %v225_v57 = vpop.permute.xlu0 %224 }
 0x181   :  { %1027 = vmatpush.xpose.msk.msrb.mxu0 %vm175_vm2, %v225_v57  ;;  %1035 = vmatpush.xpose.msk.msrb.mxu2 %vm175_vm2, %v225_v57 }
 0x184   :  { %1028 = vmatmul.msk.f32.vlgmr.msrb.gmra.mxu0 %vm175_vm2, %v222_v58  ;;  %1036 = vmatmul.msk.f32.vlgmr.msrb.gmra.mxu2 %vm175_vm2, %v358_v59  ;;  %v1071_v58 = vld [vmem:[#allocation2 + $0x9c] sm:$0xf0]  ;;  %v1077_v59 = vld [vmem:[#allocation2 + $0x98] sm:$0xf] }
 0x185   :  { %1030 = vmatpush.xpose.msk.msra.mxu0 %vm175_vm2, %v225_v57  ;;  %589 = vmatpush.bf16.msra.mxu2 %v1082_v46 }
 0x18c   :  { %1031 = vmatmul.msk.f32.vlgmr.msra.gmra.mxu0 %vm175_vm2, %v268_v61  ;;  %v1144_v61 = vld [vmem:[#allocation2 + $0xa0] sm:$0xf0] }
 0x201   :  { %v248_v62 = vpop.f32.mrf.mxu0 }
 0x202   :  { %v252_v13 = vsel %vm251_vm3, %v248_v62, -inf }
 0x207   :  { %v379_v63 = vpop.f32.mrf.mxu2 }
 0x208   :  { %v382_v0 = vsel %vm251_vm3, %v379_v63, -inf }
 0x209   :  { %383 = vmax.xlane.f32.xlu1 %v382_v0  ;;  %v289_v1 = vpop.f32.mrf.mxu0 }
 0x20a   :  { %v292_v2 = vsel %vm251_vm3, %v289_v1, -inf }
 0x20b   :  { %293 = vmax.xlane.f32.xlu0 %v292_v2 }
 0x27c   :  { %v384_v3 = vpop.xlane.xlu1 %383 }
 0x27d   :  { %v385_v4 = vsub.f32 %v379_v63, %v384_v3  ;;  %v1078_v63 = vor.u32 %v1144_v61, %v1077_v59  ;;  %v1057_v3 = vld [vmem:[#allocation2 + $0x78] sm:$0xf] }
 0x27e   :  { %v294_v5 = vpop.xlane.xlu0 %293 }
 0x27f   :  { %v386_v6 = vmul.f32 1.442695, %v385_v4  ;;  %v295_v7 = vsub.f32 %v289_v1, %v294_v5  ;;  %v1140_v4 = vld [vmem:[#allocation2 + $0x80] sm:$0xf0]  ;;  %v1139_v5 = vld [vmem:[#allocation2 + $0x7c] sm:$0xf] }
 0x281   :  { %1165 = vpow2.f32 %v386_v6  ;;  %v296_v8 = vmul.f32 1.442695, %v295_v7  ;;  %v1058_v6 = vor.u32 %v1140_v4, %v1057_v3  ;;  %v1059_v7 = vld [vmem:[#allocation2 + $0x84] sm:$0xf0] }
 0x283   :  { %1167 = vpow2.f32 %v296_v8  ;;  %v1065_v8 = vld [vmem:[#allocation2 + $0x80] sm:$0xf] }
 0x287   :  { %v1166_v9 = vpop.eup %1165 }
 0x288   :  { %v388_v10 = vsel %vm251_vm3, %v1166_v9, 0.0 }
 0x289   :  { %v1168_v11 = vpop.eup %1167  ;;  %389 = vadd.xlane.f32.xlu2 %v388_v10  ;;  %v1141_v10 = vld [vmem:[#allocation2 + $0x88] sm:$0xf0] }
 0x28a   :  { %v298_v12 = vsel %vm251_vm3, %v1168_v11, 0.0 }
 0x28b   :  { %299 = vadd.xlane.f32.xlu1 %v298_v12  ;;  %v1045_v12 = vld [vmem:[#allocation2 + $0x60] sm:$0xf] }
 0x293   :  { %253 = vmax.xlane.f32.xlu1 %v252_v13  ;;  %v1137_v13 = vld [vmem:[#allocation2 + $0x68] sm:$0xf0] }
 0x2a1   :  { %304 = vrot.lane.b32.xlu2 %v202_v50, %s1256_s2  ;;  %v1086_v50 = vor.u32 %v1145_v45, %v1083_v47 }
 0x2a3   :  { %602 = vmatpush.bf16.msrb.mxu3 %v1086_v50 }
 0x2fc   :  { %v390_v14 = vpop.xlane.xlu2 %389 }
 0x2fe   :  { %v300_v15 = vpop.xlane.xlu1 %299 }
 0x2ff   :  { %1169 = vrcp.f32 %v300_v15  ;;  %v1046_v15 = vor.u32 %v1137_v13, %v1045_v12 }
 0x300   :  { %1171 = vrcp.f32 %v390_v14  ;;  %v1136_v14 = vld [vmem:[#allocation2 + $0x64] sm:$0xf] }
 0x304   :  { %v305_v18 = vpop.permute.xlu2 %304 }
 0x305   :  { %v1170_v19 = vpop.eup %1169  ;;  %325 = vmatpush.msrb.mxu0 %v305_v18  ;;  %v1138_v18 = vld [vmem:[#allocation2 + $0x70] sm:$0xf0] }
 0x306   :  { %v302_v20 = vmul.f32 %v1170_v19, %v1168_v11  ;;  %v1172_v21 = vpop.eup %1171  ;;  %v254_v26 = vpop.xlane.xlu1 %253  ;;  %v1066_v11 = vor.u32 %v1141_v10, %v1065_v8  ;;  %v1050_v19 = vor.u32 %v1136_v14, %v1047_v16 }
 0x307   :  { %411 = vmatpush.msra.mxu0 %v215_v17  ;;  %v392_v22 = vmul.f32 %v1172_v21, %v1166_v9  ;;  %v255_v27 = vsub.f32 %v248_v62, %v254_v26  ;;  %v1074_v62 = vor.u32 %v1142_v54, %v1071_v58  ;;  %v1062_v9 = vor.u32 %v1139_v5, %v1059_v7  ;;  %v1162_v26 = vld [vmem:[%s1460_s5] ss:$0 sm:$0xff] }
 0x308   :  { %1032 = vmatmul.msk.f32.vlgmr.msrb.gmra.mxu0 %vm251_vm3, %v302_v20 }
 0x309   :  { %1039 = vmatpush.xpose.msk.msrb.mxu0 %vm175_vm2, %v225_v57  ;;  %v256_v29 = vmul.f32 1.442695, %v255_v27  ;;  %v1070_v57 = vor.u32 %v1143_v53, %v1069_v52  ;;  %603 = vmatpush.bf16.msrb.mxu3 %v1074_v62 }
 0x30b   :  { %1173 = vpow2.f32 %v256_v29  ;;  %590 = vmatpush.bf16.msra.mxu2 %v1070_v57 }
 0x30d   :  { %604 = vmatpush.bf16.msrb.mxu3 %v1062_v9 }
 0x30f   :  { %591 = vmatpush.bf16.msra.mxu2 %v1058_v6 }
 0x310   :  { %1037 = vmatmul.msk.f32.vlgmr.msra.gmra.mxu0 %vm251_vm3, %v392_v22 }
 0x311   :  { %v1174_v32 = vpop.eup %1173  ;;  %615 = vmatpush.bf16.msra.mxu0 %v1090_v51  ;;  %605 = vmatpush.bf16.msrb.mxu3 %v1050_v19 }
 0x312   :  { %v258_v33 = vsel %vm251_vm3, %v1174_v32, 0.0 }
 0x313   :  { %592 = vmatpush.bf16.msra.mxu2 %v1046_v15 }
 0x315   :  { %616 = vmatpush.bf16.msra.mxu0 %v1078_v63 }
 0x318   :  { %1040 = vmatmul.msk.f32.vlgmr.msrb.gmra.mxu0 %vm175_vm2, %v422_v24 }
 0x319   :  { %617 = vmatpush.bf16.msra.mxu0 %v1066_v11 }
 0x385   :  { %v1378_v25 = vpop.f32.mrf.mxu0 }
 0x38d   :  { %v1380_v28 = vpop.f32.mrf.mxu0 }
 0x395   :  { %v443_v30 = vpop.f32.mrf.mxu0 }
 0x396   :  { %v446_v31 = vsel %vm251_vm3, %v443_v30, -inf }
 0x397   :  { %447 = vmax.xlane.f32.xlu1 %v446_v31 }
 0x39f   :  { %259 = vadd.xlane.f32.xlu1 %v258_v33 }
 0x3b8   :  { %458 = vrot.lane.b32.xlu1 %v215_v17, %s1256_s2  ;;  %v1053_v17 = vld [vmem:[#allocation2 + $0x68] sm:$0xf] }
 0x3b9   :  { %v1054_v20 = vor.u32 %v1138_v18, %v1053_v17 }
 0x3bb   :  { %618 = vmatpush.bf16.msra.mxu0 %v1054_v20 }
 0x40a   :  { %v448_v34 = vpop.xlane.xlu1 %447 }
 0x40b   :  { %v449_v35 = vsub.f32 %v443_v30, %v448_v34 }
 0x40d   :  { %v450_v36 = vmul.f32 1.442695, %v449_v35 }
 0x40f   :  { %1175 = vpow2.f32 %v450_v36 }
 0x412   :  { %v260_v37 = vpop.xlane.xlu1 %259 }
 0x413   :  { %1177 = vrcp.f32 %v260_v37 }
 0x415   :  { %v1176_v38 = vpop.eup %1175 }
 0x416   :  { %v452_v39 = vsel %vm251_vm3, %v1176_v38, 0.0 }
 0x417   :  { %453 = vadd.xlane.f32.xlu2 %v452_v39 }
 0x419   :  { %v1178_v40 = vpop.eup %1177 }
 0x41a   :  { %v262_v41 = vmul.f32 %v1178_v40, %v1174_v32 }
 0x41c   :  { %1033 = vmatmul.msk.f32.vlgmr.msrb.gmra.mxu1 %vm251_vm3, %v262_v41 }
 0x42a   :  { %v459_v42 = vpop.permute.xlu1 %458 }
 0x42b   :  { %479 = vmatpush.msra.mxu1 %v459_v42 }
 0x48a   :  { %v454_v0 = vpop.xlane.xlu2 %453 }
 0x48b   :  { %1179 = vrcp.f32 %v454_v0 }
 0x491   :  { %v1180_v1 = vpop.eup %1179 }
 0x492   :  { %v456_v2 = vmul.f32 %v1180_v1, %v1176_v38 }
 0x494   :  { %1041 = vmatmul.msk.f32.vlgmr.msra.gmra.mxu1 %vm251_vm3, %v456_v2 }
 0x499   :  { %v350_v21 = vpop.f32.mrf.mxu1 }
 0x49a   :  { %v351_v22 = vadd.f32 %v350_v21, %v1378_v25  ;;  %v1042_v25 = vld [vmem:[%s1459_s4 + $0x3] sm:$0x7] }
 0x49b   :  { %v512_v35 = vperm.slane %v1042_v25, 0  ;;  %v513_v36 = vperm.slane %v1042_v25, 1 }
 0x49c   :  { %v416_v24 = vadd.f32 %v1380_v28, %v351_v22  ;;  %v514_v28 = vperm.slane %v1042_v25, 2  ;;  %v1148_v25 = vld [vmem:[%s1462_s7] sm:$0xff] }
 0x511   :  { %v481_v27 = vpop.f32.mrf.mxu1 }
 0x512   :  { %v484_v29 = vadd.f32 %v481_v27, %v416_v24  ;;  %v1151_v24 = vld [vmem:[%s1462_s7 + $0x18] sm:$0xff] }
 0x514   :  { %v489_v30 = vadd.f32 %v1162_v26, %v484_v29  ;;  %v1150_v26 = vld [vmem:[%s1462_s7 + $0x10] sm:$0xff] }
 0x516   :  { %v490_v31 = vmax.f32 %v489_v30, 0.0 }
 0x518   :  { %v491_v32 = vpack.c.bf16 %v490_v31, %v490_v31 }
 0x51a   :  { %1091 = vmatmul.msk.bf16.vlgmr.msra.gmra.mxu2 %vm175_vm2, %v491_v32  ;;  %1092 = vmatmul.msk.bf16.vlgmr.msrb.gmra.mxu3 %vm175_vm2, %v491_v32 }
 0x51b   :  { %1093 = vmatmul.msk.bf16.vlgmr.msra.gmra.mxu0 %vm175_vm2, %v491_v32  ;;  %v1149_v32 = vld [vmem:[%s1462_s7 + $0x8] sm:$0xff] }
 0x598   :  { %v620_v33 = vpop.f32.mrf.mxu0 }
 0x599   :  { %v1399_v34 = vadd.f32 %v620_v33, %v514_v28 }
 0x59b   :  { %802 = vmatpush.msrb.mxu0 %v1399_v34 }
 0x59d   :  { %v594_v37 = vpop.f32.mrf.mxu2  ;;  %v607_v38 = vpop.f32.mrf.mxu3 }
 0x59e   :  { %v595_v39 = vadd.f32 %v594_v37, %v512_v35  ;;  %v608_v40 = vadd.f32 %v607_v38, %v513_v36  ;;  %v1163_v36 = vld [vmem:[%s1460_s5 + $0x1] ss:$0 sm:$0xff]  ;;  %s1257_s5 = smov [#allocation5]  }
 0x59f   :  { %s962_s7 = sshll.u32 %s1257_s5, 4  ;;  %s963_s7 = int_to_ptr.vmem [resolvable:$true] %s962_s7 }
 0x5a0   :  { %v622_v41 = vpop.f32.mrf.mxu0  ;;  %700 = vrot.lane.b32.xlu2 %v608_v40, %s1256_s2  ;;  %744 = vmatpush.msrb.mxu2 %v608_v40  ;;  %v624_v45 = vmul.f32 %v1337_v55, %v595_v39  ;;  %v749_v46 = vmul.f32 %v1342_v56, %v595_v39  ;;  %v664_v48 = vmul.f32 %v1356_v60, %v595_v39 }
 0x5a1   :  { %626 = vrot.lane.b32.xlu0 %v595_v39, %s1256_s2  ;;  %v808_v63 = vmul.f32 %v1373_v23, %v595_v39 }
 0x5a5   :  { %v596_v42 = vpop.f32.mrf.mxu2  ;;  %v609_v43 = vpop.f32.mrf.mxu3 }
 0x5a6   :  { %v1164_v42 = vld [vmem:[%s1463_s8] ss:$0 sm:$0xff] }
 0x5fa   :  { %v701_v47 = vpop.permute.xlu2 %700 }
 0x613   :  { %v627_v44 = vpop.permute.xlu0 %626 }
 0x614   :  { %1094 = vmatpush.xpose.msk.msrb.mxu1 %vm175_vm2, %v627_v44  ;;  %1100 = vmatpush.xpose.msk.msra.mxu3 %vm175_vm2, %v627_v44 }
 0x617   :  { %1095 = vmatmul.msk.f32.vlgmr.msrb.gmra.mxu1 %vm175_vm2, %v624_v45  ;;  %1101 = vmatmul.msk.f32.vlgmr.msra.gmra.mxu3 %vm175_vm2, %v749_v46 }
 0x618   :  { %1096 = vmatpush.xpose.msk.msra.mxu1 %vm175_vm2, %v627_v44  ;;  %922 = vmatpush.bf16.msrb.mxu3 %v1151_v24 }
 0x61c   :  { %721 = vmatpush.msrb.mxu1 %v701_v47  ;;  %923 = vmatpush.bf16.msrb.mxu3 %v1150_v26 }
 0x61f   :  { %1097 = vmatmul.msk.f32.vlgmr.msra.gmra.mxu1 %vm175_vm2, %v664_v48 }
 0x620   :  { %1103 = vmatpush.xpose.msk.msra.mxu1 %vm175_vm2, %v627_v44  ;;  %924 = vmatpush.bf16.msrb.mxu3 %v1149_v32 }
 0x624   :  { %925 = vmatpush.bf16.msrb.mxu3 %v1148_v25 }
 0x694   :  { %v650_v49 = vpop.f32.mrf.mxu1 }
 0x695   :  { %v653_v50 = vsel %vm251_vm3, %v650_v49, -inf }
 0x696   :  { %654 = vmax.xlane.f32.xlu2 %v653_v50 }
 0x69a   :  { %v770_v60 = vpop.f32.mrf.mxu3 }
 0x69b   :  { %v773_v58 = vsel %vm251_vm3, %v770_v60, -inf }
 0x69c   :  { %v685_v51 = vpop.f32.mrf.mxu1 }
 0x69d   :  { %v688_v55 = vsel %vm251_vm3, %v685_v51, -inf }
 0x69e   :  { %689 = vmax.xlane.f32.xlu1 %v688_v55 }
 0x709   :  { %v655_v0 = vpop.xlane.xlu2 %654 }
 0x70a   :  { %v656_v1 = vsub.f32 %v650_v49, %v655_v0 }
 0x70c   :  { %v657_v3 = vmul.f32 1.442695, %v656_v1 }
 0x711   :  { %v690_v56 = vpop.xlane.xlu1 %689 }
 0x712   :  { %v691_v52 = vsub.f32 %v685_v51, %v690_v56 }
 0x714   :  { %v692_v53 = vmul.f32 1.442695, %v691_v52 }
 0x716   :  { %1181 = vpow2.f32 %v692_v53 }
 0x71c   :  { %v1182_v54 = vpop.eup %1181 }
 0x71d   :  { %v694_v57 = vsel %vm251_vm3, %v1182_v54, 0.0 }
 0x71e   :  { %695 = vadd.xlane.f32.xlu0 %v694_v57 }
 0x726   :  { %774 = vmax.xlane.f32.xlu0 %v773_v58 }
 0x791   :  { %v696_v59 = vpop.xlane.xlu0 %695 }
 0x792   :  { %1183 = vrcp.f32 %v696_v59 }
 0x793   :  { %1185 = vpow2.f32 %v657_v3 }
 0x798   :  { %v1184_v61 = vpop.eup %1183 }
 0x799   :  { %v698_v62 = vmul.f32 %v1184_v61, %v1182_v54  ;;  %v775_v4 = vpop.xlane.xlu0 %774  ;;  %v1186_v9 = vpop.eup %1185 }
 0x79a   :  { %v776_v5 = vsub.f32 %v770_v60, %v775_v4  ;;  %v659_v10 = vsel %vm251_vm3, %v1186_v9, 0.0 }
 0x79b   :  { %1098 = vmatmul.msk.f32.vlgmr.msrb.gmra.mxu1 %vm251_vm3, %v698_v62 }
 0x79c   :  { %v777_v8 = vmul.f32 1.442695, %v776_v5 }
 0x79e   :  { %1187 = vpow2.f32 %v777_v8 }
 0x7a3   :  { %1104 = vmatmul.msk.f32.vlgmr.msra.gmra.mxu1 %vm175_vm2, %v808_v63 }
 0x7a4   :  { %v1188_v23 = vpop.eup %1187 }
 0x7a5   :  { %v779_v11 = vsel %vm251_vm3, %v1188_v23, 0.0 }
 0x818   :  { %v723_v2 = vpop.f32.mrf.mxu1 }
 0x820   :  { %v829_v6 = vpop.f32.mrf.mxu1 }
 0x821   :  { %v832_v7 = vsel %vm251_vm3, %v829_v6, -inf }
 0x822   :  { %833 = vmax.xlane.f32.xlu1 %v832_v7 }
 0x82a   :  { %660 = vadd.xlane.f32.xlu1 %v659_v10 }
 0x832   :  { %780 = vadd.xlane.f32.xlu1 %v779_v11 }
 0x895   :  { %v834_v12 = vpop.xlane.xlu1 %833 }
 0x896   :  { %v835_v13 = vsub.f32 %v829_v6, %v834_v12 }
 0x898   :  { %v836_v14 = vmul.f32 1.442695, %v835_v13 }
 0x89a   :  { %1189 = vpow2.f32 %v836_v14 }
 0x89d   :  { %v661_v15 = vpop.xlane.xlu1 %660 }
 0x89e   :  { %1191 = vrcp.f32 %v661_v15 }
 0x8a0   :  { %v1190_v16 = vpop.eup %1189 }
 0x8a1   :  { %v838_v17 = vsel %vm251_vm3, %v1190_v16, 0.0 }
 0x8a2   :  { %839 = vadd.xlane.f32.xlu0 %v838_v17 }
 0x8a4   :  { %v1192_v18 = vpop.eup %1191 }
 0x8a5   :  { %v663_v19 = vmul.f32 %v1192_v18, %v1186_v9  ;;  %v781_v20 = vpop.xlane.xlu1 %780 }
 0x8a6   :  { %1193 = vrcp.f32 %v781_v20 }
 0x8a7   :  { %1099 = vmatmul.msk.f32.vlgmr.msrb.gmra.mxu2 %vm251_vm3, %v663_v19 }
 0x8ac   :  { %v1194_v21 = vpop.eup %1193 }
 0x8ad   :  { %v783_v22 = vmul.f32 %v1194_v21, %v1188_v23 }
 0x8af   :  { %1102 = vmatmul.msk.f32.vlgmr.msrb.gmra.mxu0 %vm251_vm3, %v783_v22 }
 0x8b6   :  { %844 = vrot.lane.b32.xlu0 %v1399_v34, %s1256_s2 }
 0x915   :  { %v840_v27 = vpop.xlane.xlu0 %839 }
 0x916   :  { %1195 = vrcp.f32 %v840_v27 }
 0x91c   :  { %v1196_v29 = vpop.eup %1195 }
 0x91d   :  { %v842_v30 = vmul.f32 %v1196_v29, %v1190_v16 }
 0x928   :  { %v845_v31 = vpop.permute.xlu0 %844 }
 0x929   :  { %865 = vmatpush.msra.mxu2 %v845_v31 }
 0x92a   :  { %1105 = vmatmul.msk.f32.vlgmr.msra.gmra.mxu2 %vm251_vm3, %v842_v30  ;;  %v746_v28 = vpop.f32.mrf.mxu2 }
 0x92b   :  { %v747_v33 = vadd.f32 %v746_v28, %v723_v2 }
 0x92c   :  { %v804_v34 = vpop.f32.mrf.mxu0 }
 0x92d   :  { %v807_v35 = vadd.f32 %v804_v34, %v747_v33 }
 0x9ad   :  { %v867_v37 = vpop.f32.mrf.mxu2 }
 0x9ae   :  { %v870_v38 = vadd.f32 %v867_v37, %v807_v35 }
 0x9b0   :  { %v876_v39 = vadd.f32 %v1163_v36, %v870_v38 }
 0x9b2   :  { %v877_v40 = vmax.f32 %v876_v39, 0.0 }
 0x9b4   :  { %v878_v41 = vpack.c.bf16 %v877_v40, %v877_v40 }
 0x9b6   :  { %1123 = vmatmul.msk.bf16.vlgmr.msrb.gmra.mxu3 %vm175_vm2, %v878_v41 }
 0xa39   :  { %v927_v43 = vpop.f32.mrf.mxu3 }
 0xa3a   :  { %v928_v44 = vadd.f32 %v1164_v42, %v927_v43 }
 0xa3c   :  { %v931_v45 = vmax.f32 %v928_v44, 0.0 }
 0xa3e   :  { %v932_v46 = vsel %vm57_vm1, %v931_v45, -inf }
 0xa3f   :  { %933 = vmax.xlane.f32.xlu1 %v932_v46 }
 0xa41   :  { %v929_v47 = vpop.f32.mrf.mxu3 }
 0xab2   :  { %v934_v48 = vpop.xlane.xlu1 %933 }
 0xab3   :  { %v935_v49 = vsub.f32 %v931_v45, %v934_v48 }
 0xab5   :  { %v936_v50 = vmul.f32 1.442695, %v935_v49 }
 0xab7   :  { %1197 = vpow2.f32 %v936_v50 }
 0xabd   :  { %v1198_v51 = vpop.eup %1197 }
 0xabe   :  { %v938_v55 = vsel %vm57_vm1, %v1198_v51, 0.0 }
 0xabf   :  { %939 = vadd.xlane.f32.xlu2 %v938_v55 }
 0xb32   :  { %v940_v56 = vpop.xlane.xlu2 %939 }
 0xb33   :  { %1199 = vrcp.f32 %v940_v56  ;;  %v952_v57 = vand.u32 2147483648, %v940_v56  ;;  %v950_v58 = vand.u32 2147483647, %v940_v56  ;;  %vm946_vm5 = vweird.f32 %v940_v56 }
 0xb35   :  { %v953_v61 = vor.u32 1.1754944e-38, %v952_v57  ;;  %vm951_vm7 = vcmp.eq.f32.partialorder %v950_v58, 8.507059e+37 }
 0xb39   :  { %v1200_v52 = vpop.eup %1199 }
 0xb3a   :  { %v942_v53 = vmul.f32 %v1200_v52, %v940_v56  ;;  %vm947_vm4 = vweird.f32 %v1200_v52 }
 0xb3b   :  { %vm948_vm6 = vmor %vm946_vm5, %vm947_vm4 }
 0xb3c   :  { %v943_v54 = vsub.f32 1.0, %v942_v53 }
 0xb3e   :  { %v944_v60 = vmul.f32 %v1200_v52, %v943_v54 }
 0xb40   :  { %v945_v59 = vadd.f32 %v1200_v52, %v944_v60 }
 0xb42   :  { %v949_v62 = vsel %vm948_vm6, %v1200_v52, %v945_v59 }
 0xb43   :  { %v954_v63 = vsel %vm951_vm7, %v953_v61, %v949_v62 }
 0xb44   :  { %v955_v0 = vmul.f32 %v1198_v51, %v954_v63 }
 0xb46   :  { %956 = vst.msk [vmem:[#allocation5] sm:$0xff] %vm57_vm1, %v955_v0 }
 0xb47   :  { %967 = dma.vmem_to_hbm [thread:$0]  %s963_s7, 128, %s965_s22, [#allocation4]  }
 0xb48   :  { %1251 = dma.done.wait [#allocation4], 128  }
 0xb49   :  { %1252 = vsyncadd [#allocation4], 4294967168 }
 0xb4a   :  { %972 = vsyncpa [#allocation3], 1 }
 0xb4b   :  { %973 = vsyncpa [#allocation4], 1 }

</bundles_post_ra>
